<compile_context>
chip_gen: v5e
topology: v5e:2x2
jax: 0.10.0
libtpu: 0.0.40
codegen_flags: <defaults>
</compile_context>

<pallas_src>
import functools

import jax
import jax.numpy as jnp
from jax.experimental import pallas as pl
from jax.experimental.pallas import tpu as pltpu

MM_DTYPE = jnp.bfloat16  # matmul input dtype (accumulation stays f32)


def _bottleneck_kernel(x_ref, m_ref, w1_ref, b1_ref, w2_ref, b2_ref, out_ref,
                       *, H, W, add):
    # x_ref : (1, C1, HW) f32 -- one batch element, spatial flattened on lanes
    # m_ref : (9, HW)     f32 -- 0/1 validity masks for the 9 taps (same-pad 3x3)
    # w1_ref: (Cm, 9*C1)  bf16 -- cv1 weight, BN folded, im2col layout
    # b1_ref: (Cm, 1)     f32
    # w2_ref: (C2, 9*Cm)  bf16 -- cv2 weight, BN folded, im2col layout
    # b2_ref: (C2, 1)     f32
    # out   : (1, C2, HW) f32
    HW = H * W
    x = x_ref[0]                 # (C1, HW)
    masks = m_ref[...]           # (9, HW)

    def conv3x3_silu(act, w_mat, b):
        # act: (Cin, HW) f32; w_mat: (Cout, 9*Cin) bf16; b: (Cout, 1) f32
        taps = []
        t = 0
        for dy in (-1, 0, 1):
            for dx in (-1, 0, 1):
                s = dy * W + dx                      # flat source offset
                if s == 0:
                    taps.append(act)                 # center tap: mask is all ones
                else:
                    shifted = pltpu.roll(act, shift=(-s) % HW, axis=1)
                    taps.append(shifted * masks[t:t + 1])
                t += 1
        patches = jnp.concatenate(taps, axis=0).astype(MM_DTYPE)   # (9*Cin, HW)
        acc = jnp.dot(w_mat, patches, preferred_element_type=jnp.float32)
        acc = acc + b                                # (Cout, HW), lane-dense
        return acc * jax.nn.sigmoid(acc)             # SiLU in f32

    y1 = conv3x3_silu(x, w1_ref[...], b1_ref[...])   # (Cm, HW)
    y2 = conv3x3_silu(y1, w2_ref[...], b2_ref[...])  # (C2, HW)
    out_ref[0] = (x + y2) if add else y2


def bottleneck(x_nchw, w1_hwio, b1, w2_hwio, b2, *, shortcut=True):
    """x_nchw: (N, C1, H, W) f32 (torch layout). Returns (N, C2, H, W) f32."""
    N, C1, H, W = x_nchw.shape
    Cm = w1_hwio.shape[3]
    C2 = w2_hwio.shape[3]
    add = bool(shortcut and (C1 == C2))   # matches PyTorch: shortcut and c1 == c2
    HW = H * W

    # ---- layout / parameter prep (glue, outside the kernel) ----------------
    x_flat = x_nchw.reshape(N, C1, HW).astype(jnp.float32)
    # im2col weight layout: w_mat[co, (3*dyi + dxi)*Cin + ci] = w_hwio[dyi, dxi, ci, co]
    w1_mat = jnp.transpose(w1_hwio, (3, 0, 1, 2)).reshape(Cm, 9 * C1).astype(MM_DTYPE)
    w2_mat = jnp.transpose(w2_hwio, (3, 0, 1, 2)).reshape(C2, 9 * Cm).astype(MM_DTYPE)
    b1c = b1.reshape(Cm, 1).astype(jnp.float32)
    b2c = b2.reshape(C2, 1).astype(jnp.float32)

    # 0/1 validity masks for the 9 taps of a same-padded 3x3 conv on an HxW image
    # (shared by both stages since both are 3x3 / pad 1 on the same spatial size).
    yy, xx = jnp.meshgrid(jnp.arange(H), jnp.arange(W), indexing="ij")
    yy = yy.reshape(-1)
    xx = xx.reshape(-1)
    masks = jnp.stack([
        ((yy + dy >= 0) & (yy + dy < H) & (xx + dx >= 0) & (xx + dx < W))
        for dy in (-1, 0, 1) for dx in (-1, 0, 1)
    ]).astype(jnp.float32)                                          # (9, HW)

    kernel = functools.partial(_bottleneck_kernel, H=H, W=W, add=add)

    out = pl.pallas_call(
        kernel,
        out_shape=jax.ShapeDtypeStruct((N, C2, HW), jnp.float32),
        grid_spec=pltpu.PrefetchScalarGridSpec(
            num_scalar_prefetch=0,
            grid=(N,),
            in_specs=[
                pl.BlockSpec((1, C1, HW), lambda n: (n, 0, 0)),
                pl.BlockSpec((9, HW), lambda n: (0, 0)),
                pl.BlockSpec((Cm, 9 * C1), lambda n: (0, 0)),
                pl.BlockSpec((Cm, 1), lambda n: (0, 0)),
                pl.BlockSpec((C2, 9 * Cm), lambda n: (0, 0)),
                pl.BlockSpec((C2, 1), lambda n: (0, 0)),
            ],
            out_specs=pl.BlockSpec((1, C2, HW), lambda n: (n, 0, 0)),
        ),
        compiler_params=pltpu.CompilerParams(
            dimension_semantics=("parallel",)),
    )(x_flat, masks, w1_mat, b1c, w2_mat, b2c)
    return out.reshape(N, C2, H, W)


# --------------------------- parameter construction --------------------------
def _fold_bn(w_hwio, gamma, beta, mean, var, eps=1e-5):
    """Fold inference-mode BatchNorm into a conv weight (HWIO) + bias."""
    scale = gamma / jnp.sqrt(var + eps)              # (Cout,)
    return w_hwio * scale, beta - mean * scale


def make_params(c1, c2, e=0.5, seed=0):
    c_ = int(c2 * e)
    keys = jax.random.split(jax.random.PRNGKey(seed), 8)

    def bn_params(k, c):
        k1, k2, k3, k4 = jax.random.split(k, 4)
        gamma = jax.random.uniform(k1, (c,), jnp.float32, 0.5, 1.5)
        beta = 0.1 * jax.random.normal(k2, (c,), jnp.float32)
        mean = 0.1 * jax.random.normal(k3, (c,), jnp.float32)
        var = jax.random.uniform(k4, (c,), jnp.float32, 0.5, 1.5)
        return gamma, beta, mean, var

    w1_raw = 0.2 * jax.random.normal(keys[0], (3, 3, c1, c_), jnp.float32)
    w1_eff, b1 = _fold_bn(w1_raw, *bn_params(keys[1], c_))

    w2_raw = 0.2 * jax.random.normal(keys[2], (3, 3, c_, c2), jnp.float32)
    w2_eff, b2 = _fold_bn(w2_raw, *bn_params(keys[3], c2))
    return w1_eff, b1, w2_eff, b2


# ------------------------------ pure-JAX reference ---------------------------
def reference(x_nchw, w1_hwio, b1, w2_hwio, b2, add=True):
    # Mirrors the kernel's precision policy: bf16 matmul inputs, f32 accumulation,
    # bias / SiLU / residual in f32.
    def conv(a, w):
        return jax.lax.conv_general_dilated(
            a.astype(MM_DTYPE), w.astype(MM_DTYPE), (1, 1), [(1, 1), (1, 1)],
            dimension_numbers=("NCHW", "HWIO", "NCHW"),
            preferred_element_type=jnp.float32)

    y1 = jax.nn.silu(conv(x_nchw, w1_hwio) + b1.reshape(1, -1, 1, 1))
    y2 = jax.nn.silu(conv(y1, w2_hwio) + b2.reshape(1, -1, 1, 1))
    return x_nchw + y2 if add else y2


if __name__ == "__main__":
    # Bottleneck(c1=4, c2=4, shortcut=True, k=(3,3), e=0.5) -> c_ = 2, residual active.
    N, C1, C2, H, W = 2, 4, 4, 16, 16
    x = jax.random.normal(jax.random.PRNGKey(0), (N, C1, H, W), jnp.float32)  # NCHW, like torch

    w1, b1, w2, b2 = make_params(C1, C2)

    out = bottleneck(x, w1, b1, w2, b2, shortcut=True)
    out = jax.block_until_ready(out)

    ref = reference(x, w1, b1, w2, b2, add=True)
    assert out.shape == (N, C2, H, W)
    max_err = float(jnp.max(jnp.abs(out - ref)))
    assert jnp.allclose(out, ref, atol=1e-3, rtol=1e-3), max_err

    print("KERNEL_OK")
</pallas_src>

<mosaic_0001>
module attributes {stable_mosaic.version = 11 : i64} {
  func.func @_bottleneck_kernel(%arg0: i32, %arg1: memref<1x4x256xf32, #tpu.memory_space<vmem>>, %arg2: memref<9x256xf32, #tpu.memory_space<vmem>>, %arg3: memref<2x36xbf16, #tpu.memory_space<vmem>>, %arg4: memref<2x1xf32, #tpu.memory_space<vmem>>, %arg5: memref<4x18xbf16, #tpu.memory_space<vmem>>, %arg6: memref<4x1xf32, #tpu.memory_space<vmem>>, %arg7: memref<1x4x256xf32, #tpu.memory_space<vmem>>) attributes {dimension_semantics = [#tpu.dimension_semantics<parallel>], iteration_bounds = array<i64: 2>, scalar_prefetch = 0 : i64, scratch_operands = 0 : i64, tpu.core_type = #tpu.core_type<tc>, window_params = [{transform_indices = @transform_0, window_bounds = array<i64: 1, 4, 256>}, {pipeline_mode = #tpu.pipeline_mode<synchronous>, transform_indices = @transform_1, window_bounds = array<i64: 9, 256>}, {pipeline_mode = #tpu.pipeline_mode<synchronous>, transform_indices = @transform_2, window_bounds = array<i64: 2, 36>}, {pipeline_mode = #tpu.pipeline_mode<synchronous>, transform_indices = @transform_3, window_bounds = array<i64: 2, 1>}, {pipeline_mode = #tpu.pipeline_mode<synchronous>, transform_indices = @transform_4, window_bounds = array<i64: 4, 18>}, {pipeline_mode = #tpu.pipeline_mode<synchronous>, transform_indices = @transform_5, window_bounds = array<i64: 4, 1>}, {transform_indices = @transform_6, window_bounds = array<i64: 1, 4, 256>}]} {
    %c0 = arith.constant 0 : index
    %c0_0 = arith.constant 0 : index
    %c0_1 = arith.constant 0 : index
    %0 = vector.load %arg1[%c0, %c0_0, %c0_1] : memref<1x4x256xf32, #tpu.memory_space<vmem>>, vector<1x4x256xf32>
    %1 = vector.shape_cast %0 : vector<1x4x256xf32> to vector<4x256xf32>
    %c0_2 = arith.constant 0 : index
    %c0_3 = arith.constant 0 : index
    %2 = vector.load %arg2[%c0_2, %c0_3] : memref<9x256xf32, #tpu.memory_space<vmem>>, vector<9x256xf32>
    %c0_4 = arith.constant 0 : index
    %c0_5 = arith.constant 0 : index
    %3 = vector.load %arg3[%c0_4, %c0_5] : memref<2x36xbf16, #tpu.memory_space<vmem>>, vector<2x36xbf16>
    %c0_6 = arith.constant 0 : index
    %c0_7 = arith.constant 0 : index
    %4 = vector.load %arg4[%c0_6, %c0_7] : memref<2x1xf32, #tpu.memory_space<vmem>>, vector<2x1xf32>
    %c17_i32 = arith.constant 17 : i32
    %5 = tpu.dynamic_rotate %1 by %c17_i32 dim 1 : vector<4x256xf32>, i32 -> vector<4x256xf32>
    %6 = vector.extract_strided_slice %2 {offsets = [0, 0], sizes = [1, 256], strides = [1, 1]} : vector<9x256xf32> to vector<1x256xf32>
    %7 = vector.broadcast %6 : vector<1x256xf32> to vector<4x256xf32>
    %8 = arith.mulf %5, %7 : vector<4x256xf32>
    %c16_i32 = arith.constant 16 : i32
    %9 = tpu.dynamic_rotate %1 by %c16_i32 dim 1 : vector<4x256xf32>, i32 -> vector<4x256xf32>
    %10 = vector.extract_strided_slice %2 {offsets = [1, 0], sizes = [1, 256], strides = [1, 1]} : vector<9x256xf32> to vector<1x256xf32>
    %11 = vector.broadcast %10 : vector<1x256xf32> to vector<4x256xf32>
    %12 = arith.mulf %9, %11 : vector<4x256xf32>
    %c15_i32 = arith.constant 15 : i32
    %13 = tpu.dynamic_rotate %1 by %c15_i32 dim 1 : vector<4x256xf32>, i32 -> vector<4x256xf32>
    %14 = vector.extract_strided_slice %2 {offsets = [2, 0], sizes = [1, 256], strides = [1, 1]} : vector<9x256xf32> to vector<1x256xf32>
    %15 = vector.broadcast %14 : vector<1x256xf32> to vector<4x256xf32>
    %16 = arith.mulf %13, %15 : vector<4x256xf32>
    %c1_i32 = arith.constant 1 : i32
    %17 = tpu.dynamic_rotate %1 by %c1_i32 dim 1 : vector<4x256xf32>, i32 -> vector<4x256xf32>
    %18 = vector.extract_strided_slice %2 {offsets = [3, 0], sizes = [1, 256], strides = [1, 1]} : vector<9x256xf32> to vector<1x256xf32>
    %19 = vector.broadcast %18 : vector<1x256xf32> to vector<4x256xf32>
    %20 = arith.mulf %17, %19 : vector<4x256xf32>
    %c255_i32 = arith.constant 255 : i32
    %21 = tpu.dynamic_rotate %1 by %c255_i32 dim 1 : vector<4x256xf32>, i32 -> vector<4x256xf32>
    %22 = vector.extract_strided_slice %2 {offsets = [5, 0], sizes = [1, 256], strides = [1, 1]} : vector<9x256xf32> to vector<1x256xf32>
    %23 = vector.broadcast %22 : vector<1x256xf32> to vector<4x256xf32>
    %24 = arith.mulf %21, %23 : vector<4x256xf32>
    %c241_i32 = arith.constant 241 : i32
    %25 = tpu.dynamic_rotate %1 by %c241_i32 dim 1 : vector<4x256xf32>, i32 -> vector<4x256xf32>
    %26 = vector.extract_strided_slice %2 {offsets = [6, 0], sizes = [1, 256], strides = [1, 1]} : vector<9x256xf32> to vector<1x256xf32>
    %27 = vector.broadcast %26 : vector<1x256xf32> to vector<4x256xf32>
    %28 = arith.mulf %25, %27 : vector<4x256xf32>
    %c240_i32 = arith.constant 240 : i32
    %29 = tpu.dynamic_rotate %1 by %c240_i32 dim 1 : vector<4x256xf32>, i32 -> vector<4x256xf32>
    %30 = vector.extract_strided_slice %2 {offsets = [7, 0], sizes = [1, 256], strides = [1, 1]} : vector<9x256xf32> to vector<1x256xf32>
    %31 = vector.broadcast %30 : vector<1x256xf32> to vector<4x256xf32>
    %32 = arith.mulf %29, %31 : vector<4x256xf32>
    %c239_i32 = arith.constant 239 : i32
    %33 = tpu.dynamic_rotate %1 by %c239_i32 dim 1 : vector<4x256xf32>, i32 -> vector<4x256xf32>
    %34 = vector.extract_strided_slice %2 {offsets = [8, 0], sizes = [1, 256], strides = [1, 1]} : vector<9x256xf32> to vector<1x256xf32>
    %35 = vector.broadcast %34 : vector<1x256xf32> to vector<4x256xf32>
    %36 = arith.mulf %33, %35 : vector<4x256xf32>
    %37 = tpu.concatenate %8, %12, %16, %20, %1, %24, %28, %32, %36 in 0 : vector<4x256xf32>, vector<4x256xf32>, vector<4x256xf32>, vector<4x256xf32>, vector<4x256xf32>, vector<4x256xf32>, vector<4x256xf32>, vector<4x256xf32>, vector<4x256xf32> -> vector<36x256xf32>
    %38 = arith.truncf %37 : vector<36x256xf32> to vector<36x256xbf16>
    %cst = arith.constant dense<0.000000e+00> : vector<2x256xf32>
    %39 = tpu.matmul %3, %38, %cst {dimension_numbers = #tpu.dot_dimension_numbers<[1], [0], [0], [1], [0, 0, 1, 1], [], []>} : vector<2x36xbf16>, vector<36x256xbf16>, vector<2x256xf32> -> vector<2x256xf32>
    %40 = vector.broadcast %4 : vector<2x1xf32> to vector<2x256xf32>
    %41 = arith.addf %39, %40 : vector<2x256xf32>
    %42 = arith.negf %41 : vector<2x256xf32>
    %43 = math.exp %42 : vector<2x256xf32>
    %cst_8 = arith.constant 1.000000e+00 : f32
    %44 = vector.broadcast %cst_8 : f32 to vector<2x256xf32>
    %45 = arith.addf %44, %43 : vector<2x256xf32>
    %46 = arith.divf %44, %45 : vector<2x256xf32>
    %47 = arith.mulf %41, %46 : vector<2x256xf32>
    %c0_9 = arith.constant 0 : index
    %c0_10 = arith.constant 0 : index
    %48 = vector.load %arg5[%c0_9, %c0_10] : memref<4x18xbf16, #tpu.memory_space<vmem>>, vector<4x18xbf16>
    %c0_11 = arith.constant 0 : index
    %c0_12 = arith.constant 0 : index
    %49 = vector.load %arg6[%c0_11, %c0_12] : memref<4x1xf32, #tpu.memory_space<vmem>>, vector<4x1xf32>
    %c17_i32_13 = arith.constant 17 : i32
    %50 = tpu.dynamic_rotate %47 by %c17_i32_13 dim 1 : vector<2x256xf32>, i32 -> vector<2x256xf32>
    %51 = vector.extract_strided_slice %2 {offsets = [0, 0], sizes = [1, 256], strides = [1, 1]} : vector<9x256xf32> to vector<1x256xf32>
    %52 = vector.broadcast %51 : vector<1x256xf32> to vector<2x256xf32>
    %53 = arith.mulf %50, %52 : vector<2x256xf32>
    %c16_i32_14 = arith.constant 16 : i32
    %54 = tpu.dynamic_rotate %47 by %c16_i32_14 dim 1 : vector<2x256xf32>, i32 -> vector<2x256xf32>
    %55 = vector.extract_strided_slice %2 {offsets = [1, 0], sizes = [1, 256], strides = [1, 1]} : vector<9x256xf32> to vector<1x256xf32>
    %56 = vector.broadcast %55 : vector<1x256xf32> to vector<2x256xf32>
    %57 = arith.mulf %54, %56 : vector<2x256xf32>
    %c15_i32_15 = arith.constant 15 : i32
    %58 = tpu.dynamic_rotate %47 by %c15_i32_15 dim 1 : vector<2x256xf32>, i32 -> vector<2x256xf32>
    %59 = vector.extract_strided_slice %2 {offsets = [2, 0], sizes = [1, 256], strides = [1, 1]} : vector<9x256xf32> to vector<1x256xf32>
    %60 = vector.broadcast %59 : vector<1x256xf32> to vector<2x256xf32>
    %61 = arith.mulf %58, %60 : vector<2x256xf32>
    %c1_i32_16 = arith.constant 1 : i32
    %62 = tpu.dynamic_rotate %47 by %c1_i32_16 dim 1 : vector<2x256xf32>, i32 -> vector<2x256xf32>
    %63 = vector.extract_strided_slice %2 {offsets = [3, 0], sizes = [1, 256], strides = [1, 1]} : vector<9x256xf32> to vector<1x256xf32>
    %64 = vector.broadcast %63 : vector<1x256xf32> to vector<2x256xf32>
    %65 = arith.mulf %62, %64 : vector<2x256xf32>
    %c255_i32_17 = arith.constant 255 : i32
    %66 = tpu.dynamic_rotate %47 by %c255_i32_17 dim 1 : vector<2x256xf32>, i32 -> vector<2x256xf32>
    %67 = vector.extract_strided_slice %2 {offsets = [5, 0], sizes = [1, 256], strides = [1, 1]} : vector<9x256xf32> to vector<1x256xf32>
    %68 = vector.broadcast %67 : vector<1x256xf32> to vector<2x256xf32>
    %69 = arith.mulf %66, %68 : vector<2x256xf32>
    %c241_i32_18 = arith.constant 241 : i32
    %70 = tpu.dynamic_rotate %47 by %c241_i32_18 dim 1 : vector<2x256xf32>, i32 -> vector<2x256xf32>
    %71 = vector.extract_strided_slice %2 {offsets = [6, 0], sizes = [1, 256], strides = [1, 1]} : vector<9x256xf32> to vector<1x256xf32>
    %72 = vector.broadcast %71 : vector<1x256xf32> to vector<2x256xf32>
    %73 = arith.mulf %70, %72 : vector<2x256xf32>
    %c240_i32_19 = arith.constant 240 : i32
    %74 = tpu.dynamic_rotate %47 by %c240_i32_19 dim 1 : vector<2x256xf32>, i32 -> vector<2x256xf32>
    %75 = vector.extract_strided_slice %2 {offsets = [7, 0], sizes = [1, 256], strides = [1, 1]} : vector<9x256xf32> to vector<1x256xf32>
    %76 = vector.broadcast %75 : vector<1x256xf32> to vector<2x256xf32>
    %77 = arith.mulf %74, %76 : vector<2x256xf32>
    %c239_i32_20 = arith.constant 239 : i32
    %78 = tpu.dynamic_rotate %47 by %c239_i32_20 dim 1 : vector<2x256xf32>, i32 -> vector<2x256xf32>
    %79 = vector.extract_strided_slice %2 {offsets = [8, 0], sizes = [1, 256], strides = [1, 1]} : vector<9x256xf32> to vector<1x256xf32>
    %80 = vector.broadcast %79 : vector<1x256xf32> to vector<2x256xf32>
    %81 = arith.mulf %78, %80 : vector<2x256xf32>
    %82 = tpu.concatenate %53, %57, %61, %65, %47, %69, %73, %77, %81 in 0 : vector<2x256xf32>, vector<2x256xf32>, vector<2x256xf32>, vector<2x256xf32>, vector<2x256xf32>, vector<2x256xf32>, vector<2x256xf32>, vector<2x256xf32>, vector<2x256xf32> -> vector<18x256xf32>
    %83 = arith.truncf %82 : vector<18x256xf32> to vector<18x256xbf16>
    %cst_21 = arith.constant dense<0.000000e+00> : vector<4x256xf32>
    %84 = tpu.matmul %48, %83, %cst_21 {dimension_numbers = #tpu.dot_dimension_numbers<[1], [0], [0], [1], [0, 0, 1, 1], [], []>} : vector<4x18xbf16>, vector<18x256xbf16>, vector<4x256xf32> -> vector<4x256xf32>
    %85 = vector.broadcast %49 : vector<4x1xf32> to vector<4x256xf32>
    %86 = arith.addf %84, %85 : vector<4x256xf32>
    %87 = arith.negf %86 : vector<4x256xf32>
    %88 = math.exp %87 : vector<4x256xf32>
    %cst_22 = arith.constant 1.000000e+00 : f32
    %89 = vector.broadcast %cst_22 : f32 to vector<4x256xf32>
    %90 = arith.addf %89, %88 : vector<4x256xf32>
    %91 = arith.divf %89, %90 : vector<4x256xf32>
    %92 = arith.mulf %86, %91 : vector<4x256xf32>
    %93 = arith.addf %1, %92 : vector<4x256xf32>
    %c0_23 = arith.constant 0 : index
    %c0_24 = arith.constant 0 : index
    %c0_25 = arith.constant 0 : index
    %94 = vector.load %arg7[%c0_23, %c0_24, %c0_25] : memref<1x4x256xf32, #tpu.memory_space<vmem>>, vector<1x4x256xf32>
    %95 = vector.shape_cast %94 : vector<1x4x256xf32> to vector<4x256xf32>
    %96 = vector.shape_cast %93 : vector<4x256xf32> to vector<1x4x256xf32>
    tpu.vector_store %arg7[%c0_23, %c0_24, %c0_25], %96 {strides = array<i32>} : memref<1x4x256xf32, #tpu.memory_space<vmem>>, vector<1x4x256xf32>,
    return
  }
  func.func @transform_0(%arg0: i32) -> (i32, i32, i32) {
    %c0_i32 = arith.constant 0 : i32
    %c0_i32_0 = arith.constant 0 : i32
    %c0_i32_1 = arith.constant 0 : i32
    return %arg0, %c0_i32, %c0_i32_0 : i32, i32, i32
  }
  func.func @transform_1(%arg0: i32) -> (i32, i32) {
    %c0_i32 = arith.constant 0 : i32
    %c0_i32_0 = arith.constant 0 : i32
    %c0_i32_1 = arith.constant 0 : i32
    return %c0_i32, %c0_i32_0 : i32, i32
  }
  func.func @transform_2(%arg0: i32) -> (i32, i32) {
    %c0_i32 = arith.constant 0 : i32
    %c0_i32_0 = arith.constant 0 : i32
    %c0_i32_1 = arith.constant 0 : i32
    return %c0_i32, %c0_i32_0 : i32, i32
  }
  func.func @transform_3(%arg0: i32) -> (i32, i32) {
    %c0_i32 = arith.constant 0 : i32
    %c0_i32_0 = arith.constant 0 : i32
    %c0_i32_1 = arith.constant 0 : i32
    return %c0_i32, %c0_i32_0 : i32, i32
  }
  func.func @transform_4(%arg0: i32) -> (i32, i32) {
    %c0_i32 = arith.constant 0 : i32
    %c0_i32_0 = arith.constant 0 : i32
    %c0_i32_1 = arith.constant 0 : i32
    return %c0_i32, %c0_i32_0 : i32, i32
  }
  func.func @transform_5(%arg0: i32) -> (i32, i32) {
    %c0_i32 = arith.constant 0 : i32
    %c0_i32_0 = arith.constant 0 : i32
    %c0_i32_1 = arith.constant 0 : i32
    return %c0_i32, %c0_i32_0 : i32, i32
  }
  func.func @transform_6(%arg0: i32) -> (i32, i32, i32) {
    %c0_i32 = arith.constant 0 : i32
    %c0_i32_0 = arith.constant 0 : i32
    %c0_i32_1 = arith.constant 0 : i32
    return %arg0, %c0_i32, %c0_i32_0 : i32, i32, i32
  }
}

</mosaic_0001>

<bundles_post_ra>
// kernel: tpu_custom_call.1
= control target key start
LH: loop header
LB: loop body
LE: loop exit
PB: predicated region body
PF: predicated region fallthrough
CT: control target
= control target key end

     0   :  { %11 = vsyncpa [#allocation3], 0  ;;  %s1554_s0 = inlined_call_operand.hbm [shape: f32[2,4,256], index: 0, kind: input, shape index: {}]   ;;  %s1555_s1 = inlined_call_operand.hbm [shape: f32[9,256], index: 1, kind: input, shape index: {}]   ;;  %s1556_s2 = inlined_call_operand.vmem [shape: bf16[2,36], index: 2, kind: input, shape index: {}]   ;;  %s1557_s3 = inlined_call_operand.vmem [shape: f32[2,1], index: 3, kind: input, shape index: {}]   ;;  %s1558_s4 = inlined_call_operand.vmem [shape: bf16[4,18], index: 4, kind: input, shape index: {}]   ;;  %s1559_s5 = inlined_call_operand.vmem [shape: f32[4,1], index: 5, kind: input, shape index: {}]   ;;  %s1560_s6 = inlined_call_operand.hbm [shape: f32[2,4,256], index: 6, kind: output, shape index: {}]  }
   0x1   :  { %13 = vsyncpa [#allocation3 + $0x1], 0 }
   0x2   :  { %14 = vsyncpa [#allocation6], 0 }
   0x3   :  { %15 = vsyncpa [#allocation4], 0 }
   0x4   :  { %17 = vsyncpa [#allocation4 + $0x1], 0  ;;  %s1150_s21 = smov 0   ;;  %s1152_s22 = smov 0  }
   0x5   :  { %s1154_s23 = smov 0   ;;  %s1156_s24 = smov 0  }
   0x6 LB: > { %s196_s27 = sshll.u32 %s1555_s1, 4  ;;  %s1174_s28 = sadd.s32 4294967295, %s1101_s24   ;;  %s1101_s24 = sphi %s1156_s24, %s1579_s24   ;;  %s1097_s23 = sphi %s1154_s23, %s1578_s23   ;;  %s1093_s22 = sphi %s1152_s22, %s1577_s22   ;;  %s1089_s21 = sphi %s1150_s21, %s1576_s21   ;;  %s197_s27 = int_to_ptr.hbm [resolvable:$true] %s196_s27 }
   0x7   : > { %p858_p0 = scmp.ge.s32.totalorder %s1101_s24, 1  ;;  %p44_p1 = scmp.eq.s32.totalorder %s1174_s28, 0 }
   0x8   : > { %p185_p2 = scmp.lt.s32.totalorder %s1101_s24, 3  ;;  %s1103_s30 = smov [#allocation5]  }
   0x9   : > { %s198_s7 = sshll.u32 %s1103_s30, 4  ;;  %s1104_s8 = smov 256   ;;  %s199_s7 = int_to_ptr.vmem [resolvable:$true] %s198_s7 }
   0xa   : > { %p1179_p3 = pnand %p858_p0, %p185_p2  ;;  %s1105_s9 = smov 16  }
   0xb   : > { %s857_s10 = sadd.s32 4294967294, %s1101_s24   ;;  %s1190_s11 = sadd.s32 1, %s1101_s24  }
   0xc   : > { %p891_p4 = pneg %p1179_p3  ;;  %s30_s12 = sadd.s32 1, %s1097_s23 }
   0xd   : > { %s27_s13 = ssub.s32 %s1101_s24, %s1190_s11  ;;  %p37_p7 = scmp.ne.s32.totalorder %s1097_s23, %s1093_s22 }
   0xe   : > { %p892_p6 = pnand %p891_p4, %p44_p1  ;;  %p28_p8 = scmp.eq.s32.totalorder %s27_s13, 0 }
   0xf   : > { %p38_p9 = scmp.eq.s32.totalorder %s1101_s24, 0  ;;  %p43_p10 = scmp.ne.s32.totalorder %s1093_s22, %s1089_s21 }
  0x10   : > { %894 = dma.hbm_to_vmem [thread:$0]  (!%p892_p6), %s197_s27, 512, %s199_s7, [#allocation6], %s1104_s8, %s1104_s8, %s1105_s9  }
  0x11   : > { %p172_p11 = scmp.eq.s32.totalorder %s1174_s28, 1  ;;  %p1206_p12 = por %p44_p1, %p43_p10 }
  0x12   : > { %s1202_s14 = scalar_select %p28_p8, %s1097_s23, %s30_s12  }
  0x13   : > { %p1210_p13 = por %p172_p11, %p37_p7  ;;  %p178_p0 = scmp.eq.s32.totalorder %s857_s10, 1 }
  0x14   : > { %p39_p2 = por %p38_p9, %p37_p7  ;;  %s224_s17 = sand.u32 1, %s1097_s23  }
  0x15   : > { %p1215_p4 = por %p178_p0, %p43_p10  ;;  %p904_p6 = scmp.lt.s32.totalorder %s1101_s24, 2 }
  0x16   : > { %s861_s19 = sshll.u32 %s224_s17, 3  ;;  %s881_s20 = sshll.u32 %s1101_s24, 3 }
  0x17   : > { %s233_s27 = scalar_lea.hbm %s1554_s0, %s881_s20  ;;  %s228_s7 = scalar_lea.vmem [#allocation2], %s861_s19 }
  0x18   : > { %s235_s30 = sshll.u32 %s233_s27, 4  ;;  %s237_s8 = sshll.u32 %s228_s7, 4  ;;  %s236_s30 = int_to_ptr.hbm [resolvable:$true] %s235_s30  ;;  %s238_s8 = int_to_ptr.vmem [resolvable:$true] %s237_s8 }
  0x19   : > { %p1224_p8 = pnand %p904_p6, %p39_p2  ;;  %s225_s10 = scalar_lea.sflag [#allocation3], %s224_s17 }
  0x1a   : > { %s1001_s12 = sshra.s32 %s236_s30, 4  ;;  %s1008_s19 = scalar_lea.hbm %s1554_s0, 16  ;;  %s1002_s12 = int_to_ptr.hbm [resolvable:$true] %s1001_s12 }
  0x1b   : > { %s1003_s13 = scalar_lea.hbm %s1002_s12, 8  ;;  %p1005_p9 = pneg %p1224_p8 }
  0x1c   : > { %p1004_p7 = scmp.ne.s32.totalorder %s1002_s12, %s1003_s13  ;;  %p1009_p0 = scmp.lt.s32.totalorder %s1002_s12, %s1554_s0 }
  0x1d   : > { %p1010_p2 = scmp.lt.s32.totalorder %s1008_s19, %s1003_s13 }
  0x1e   : > { %p1006_p10 = pnand %p1005_p9, %p1004_p7 }
  0x1f   : > { %p1011_p6 = por %p1010_p2, %p1009_p0 }
  0x20   : > { %p1007_p11 = pneg %p1006_p10 }
  0x22   : > { %p1012_p5 = pnand %p1011_p6, %p1007_p11 }
  0x24   : > { %1015 = shalt.err (!%p1012_p5)
}
  0x25   : > { %898 = dma.hbm_to_vmem [thread:$0]  (!%p1224_p8), %s236_s30, 128, %s238_s8, %s225_s10  }
  0x26   : > { %246 = sbr.rel (%p1179_p3) target bundleno = 741 (0x2e5), region = 44  ;;  %s1241_s17 = sand.u32 (!%p1179_p3), 1, %s1093_s22  }
  0x27   : > { %s865_s7 = sshll.u32 (!%p1179_p3), %s1241_s17, 3  ;;  %s249_s20 = scalar_lea.sflag (!%p1179_p3), [#allocation3], %s1241_s17 }
  0x28   : > { %s252_s12 = scalar_lea.vmem (!%p1179_p3), [#allocation2], %s865_s7 }
  0x2b   : > { %1076 = dma.done.wait (%p1206_p12), %s249_s20, 128  }
  0x2c   : > { %1078 = vsyncadd (%p1206_p12), %s249_s20, 4294967168 }
  0x2d   : > { %1080 = dma.done.wait (%p44_p1), [#allocation6], 512  }
  0x2e   : > { %1082 = vsyncadd (%p44_p1), [#allocation6], 4294966784  ;;  %v1255_v0 = vld [vmem:[%s252_s12] sm:$0xff]  ;;  %s1106_s29 = smov 17   ;;  %s1107_s15 = smov 16   ;;  %v305_v26 = vlaneseq  ;;  %v1114_v28 = vmov 0  }
  0x2f   : > { %296 = vst [vmem:[#allocation1] ss:$2 sm:$0xff] %v1255_v0  ;;  %s1108_s30 = smov 1   ;;  %s1109_s8 = smov 127   ;;  %v294_v27 = vld [vmem:[%s1557_s3] sm:$0x3]  ;;  %951 = vset.pattern.permute.xlu1 %v1114_v28  ;;  %952 = vset.pattern.permute.xlu0 %v1114_v28 }
  0x30   : > { %s1110_s9 = smov 113   ;;  %s1111_s10 = smov 112   ;;  %v1287_v29 = vand.u32 127, %v305_v26  ;;  %v1289_v30 = vld [vmem:[#allocation5] sm:$0xff]  ;;  %v1292_v32 = vld [vmem:[#allocation5 + $0x8] sm:$0xff]  ;;  %vm1561_vm7 = vcmask 1043456  }
  0x31   : > { %s1112_s13 = smov 111   ;;  %s1113_s25 = smov 15   ;;  %v358_v33 = vperm.slane %v1289_v30, 3  ;;  %v406_v34 = vperm.slane %v1289_v30, 7  ;;  %v407_v35 = vperm.slane %v1292_v32, 7  ;;  %v374_v38 = vperm.slane %v1289_v30, 5 }
  0x32   : > { %vm403_vm0 = vcmp.lt.s32.totalorder %v1287_v29, 112  ;;  %vm371_vm1 = vcmp.lt.s32.totalorder %v1287_v29, 127  ;;  %vm323_vm2 = vcmp.lt.s32.totalorder %v1287_v29, 16  ;;  %v375_v39 = vperm.slane %v1292_v32, 5  ;;  %v1337_v58 = vld [vmem:[#allocation5 + $0x10] ss:$0 sm:$0xff] }
  0x33   : > { %v326_v42 = vperm.slane %v1289_v30, 1  ;;  %v327_v43 = vperm.slane %v1292_v32, 1  ;;  %vm1562_vm3 = vcmp.lt.s32.totalorder %v1287_v29, 1  ;;  %v359_v46 = vperm.slane %v1292_v32, 3  ;;  %v1339_v59 = vld [vmem:[#allocation5 + $0x18] ss:$0 sm:$0xff] }
  0x34   : > { %vm387_vm4 = vcmp.lt.s32.totalorder %v1287_v29, 113  ;;  %v390_v51 = vperm.slane %v1289_v30, 6  ;;  %v391_v54 = vperm.slane %v1292_v32, 6  ;;  %vm307_vm5 = vcmp.lt.s32.totalorder %v1287_v29, 17  ;;  %s761_s26 = scalar_lea.sflag [#allocation4], %s1241_s17 }
  0x35   : > { %v310_v57 = vperm.slane %v1289_v30, 0  ;;  %vm419_vm6 = vcmp.lt.s32.totalorder %v1287_v29, 111  ;;  %v311_v62 = vperm.slane %v1292_v32, 0  ;;  %vm479_vm8 = vcmask 1041408  }
  0x36   : > { %v297_v1 = vld.sshfl [vmem:[#allocation1] sm:$0xff pattern:$0x75316420]  ;;  %v298_v2 = vld.sshfl [vmem:[#allocation1 + $0x8] sm:$0xff pattern:$0x75316420] }
  0x37   : > { %314 = vst [vmem:[#allocation1] ss:$2 sm:$0xff] %v1255_v0  ;;  %301 = vrot.lane.b32.xlu0 %v297_v1, %s1106_s29  ;;  %vm339_vm9 = vcmp.lt.s32.totalorder %v1287_v29, 15  ;;  %vm475_vm10 = vcmask 293888  }
  0x3e   : > { %v315_v3 = vld.sshfl [vmem:[#allocation1] sm:$0xff pattern:$0x75316420]  ;;  %v316_v4 = vld.sshfl [vmem:[#allocation1 + $0x8] sm:$0xff pattern:$0x75316420] }
  0x3f   : > { %330 = vst [vmem:[#allocation1] ss:$2 sm:$0xff] %v1255_v0  ;;  %321 = vrot.lane.b32.xlu0 %v316_v4, %s1107_s15  ;;  %319 = vrot.lane.b32.xlu2 %v315_v3, %s1107_s15 }
  0x46   : > { %v331_v5 = vld.sshfl [vmem:[#allocation1] sm:$0xff pattern:$0x75316420]  ;;  %v332_v6 = vld.sshfl [vmem:[#allocation1 + $0x8] sm:$0xff pattern:$0x75316420] }
  0x47   : > { %346 = vst [vmem:[#allocation1] ss:$2 sm:$0xff] %v1255_v0 }
  0x4e   : > { %v347_v7 = vld.sshfl [vmem:[#allocation1] sm:$0xff pattern:$0x75316420]  ;;  %v348_v8 = vld.sshfl [vmem:[#allocation1 + $0x8] sm:$0xff pattern:$0x75316420] }
  0x4f   : > { %351 = vrot.lane.b32.xlu1 %v347_v7, %s1108_s30  ;;  %362 = vst [vmem:[#allocation1] ss:$2 sm:$0xff] %v1255_v0  ;;  %353 = vrot.lane.b32.xlu2 %v348_v8, %s1108_s30 }
  0x56   : > { %v363_v9 = vld.sshfl [vmem:[#allocation1] sm:$0xff pattern:$0x75316420]  ;;  %v364_v10 = vld.sshfl [vmem:[#allocation1 + $0x8] sm:$0xff pattern:$0x75316420] }
  0x57   : > { %367 = vrot.lane.b32.xlu1 %v363_v9, %s1109_s8  ;;  %378 = vst [vmem:[#allocation1] ss:$2 sm:$0xff] %v1255_v0 }
  0x5e   : > { %v380_v11 = vld.sshfl [vmem:[#allocation1 + $0x8] sm:$0xff pattern:$0x75316420]  ;;  %v379_v12 = vld.sshfl [vmem:[#allocation1] sm:$0xff pattern:$0x75316420] }
  0x5f   : > { %369 = vrot.lane.b32.xlu1 %v364_v10, %s1109_s8  ;;  %383 = vrot.lane.b32.xlu0 %v379_v12, %s1110_s9  ;;  %394 = vst [vmem:[#allocation1] ss:$2 sm:$0xff] %v1255_v0 }
  0x66   : > { %v395_v13 = vld.sshfl [vmem:[#allocation1] sm:$0xff pattern:$0x75316420]  ;;  %v396_v14 = vld.sshfl [vmem:[#allocation1 + $0x8] sm:$0xff pattern:$0x75316420] }
  0x67   : > { %385 = vrot.lane.b32.xlu1 %v380_v11, %s1110_s9  ;;  %410 = vst [vmem:[#allocation1] ss:$2 sm:$0xff] %v1255_v0  ;;  %399 = vrot.lane.b32.xlu2 %v395_v13, %s1111_s10 }
  0x6e   : > { %v411_v15 = vld.sshfl [vmem:[#allocation1] sm:$0xff pattern:$0x75316420]  ;;  %v412_v16 = vld.sshfl [vmem:[#allocation1 + $0x8] sm:$0xff pattern:$0x75316420] }
  0x6f   : > { %303 = vrot.lane.b32.xlu1 %v298_v2, %s1106_s29  ;;  %415 = vrot.lane.b32.xlu0 %v411_v15, %s1112_s13  ;;  %438 = vst [vmem:[#allocation1] ss:$2 sm:$0xff] %v1255_v0 }
  0x70   : > { %401 = vrot.lane.b32.xlu2 %v396_v14, %s1111_s10 }
  0x76   : > { %v439_v14 = vld.sshfl [vmem:[#allocation1] sm:$0xff pattern:$0x75316420]  ;;  %v440_v15 = vld.sshfl [vmem:[#allocation1 + $0x8] sm:$0xff pattern:$0x75316420] }
  0x77   : > { %417 = vrot.lane.b32.xlu0 %v412_v16, %s1112_s13  ;;  %472 = vperm.xlu1 %951, %v294_v27  }
  0x78   : > { %335 = vrot.lane.b32.xlu2 %v331_v5, %s1113_s25 }
  0x7f   : > { %337 = vrot.lane.b32.xlu0 %v332_v6, %s1113_s25 }
  0x99   : > { %v320_v17 = vpop.permute.xlu2 %319 }
  0xa9   : > { %v1282_v19 = vpop.permute.xlu0 %301  ;;  %v354_v20 = vpop.permute.xlu2 %353 }
  0xb1   : > { %v322_v22 = vpop.permute.xlu0 %321 }
  0xb2   : > { %v324_v47 = vsel %vm323_vm2, %v320_v17, %v322_v22  ;;  %v325_v48 = vsel %vm323_vm2, %v322_v22, %v320_v17  ;;  %v343_v22 = vperm.slane %v1292_v32, 2 }
  0xb3   : > { %v328_v55 = vmul.f32 %v326_v42, %v325_v48  ;;  %v1333_v56 = vmul.f32 %v327_v43, %v324_v47 }
  0xc1   : > { %v352_v18 = vpop.permute.xlu1 %351  ;;  %v400_v23 = vpop.permute.xlu2 %399 }
  0xc2   : > { %v356_v63 = vsel %vm1562_vm3, %v352_v18, %v354_v20  ;;  %v357_v1 = vsel %vm1562_vm3, %v354_v20, %v352_v18 }
  0xc3   : > { %v360_v16 = vmul.f32 %v358_v33, %v357_v1  ;;  %v361_v17 = vmul.f32 %v359_v46, %v356_v63 }
  0xc9   : > { %v368_v21 = vpop.permute.xlu1 %367 }
  0xca   : > { %v402_v31 = vpop.permute.xlu2 %401 }
  0xcb   : > { %v404_v40 = vsel %vm403_vm0, %v400_v23, %v402_v31  ;;  %v405_v41 = vsel %vm403_vm0, %v402_v31, %v400_v23 }
  0xcc   : > { %v408_v49 = vmul.f32 %v406_v34, %v404_v40  ;;  %v409_v50 = vmul.f32 %v407_v35, %v405_v41  ;;  %v428_v40 = vrot.slane %v328_v55, 4  ;;  %v429_v41 = vrot.slane %v1333_v56, 4 }
  0xce   : > { %v451_v2 = vrot.slane %v408_v49, 4  ;;  %v452_v3 = vrot.slane %v409_v50, 4 }
  0xd1   : > { %v370_v24 = vpop.permute.xlu1 %369  ;;  %v384_v25 = vpop.permute.xlu0 %383 }
  0xd2   : > { %v372_v44 = vsel %vm371_vm1, %v368_v21, %v370_v24  ;;  %v373_v45 = vsel %vm371_vm1, %v370_v24, %v368_v21  ;;  %v342_v21 = vperm.slane %v1289_v30, 2  ;;  %v336_v31 = vpop.permute.xlu2 %335 }
  0xd3   : > { %v376_v52 = vmul.f32 %v374_v38, %v372_v44  ;;  %v377_v53 = vmul.f32 %v375_v39, %v373_v45 }
  0xd5   : > { %v445_v5 = vrot.slane %v376_v52, 4  ;;  %v446_v6 = vrot.slane %v377_v53, 4  ;;  %v434_v52 = vrot.slane %v360_v16, 4  ;;  %v435_v53 = vrot.slane %v361_v17, 4 }
  0xd7   : > { %v461_v26 = vsel %vm1561_vm7, %v440_v15, %v446_v6 }
  0xd9   : > { %v386_v36 = vpop.permute.xlu1 %385 }
  0xda   : > { %v388_v60 = vsel %vm387_vm4, %v384_v25, %v386_v36  ;;  %v389_v61 = vsel %vm387_vm4, %v386_v36, %v384_v25  ;;  %v460_v25 = vsel %vm1561_vm7, %v439_v14, %v445_v5 }
  0xdb   : > { %v392_v9 = vmul.f32 %v390_v51, %v388_v60  ;;  %v393_v10 = vmul.f32 %v391_v54, %v389_v61 }
  0xdd   : > { %v462_v36 = vsel %vm1561_vm7, %v392_v9, %v451_v2 }
  0xde   : > { %v466_v49 = vpack.c.bf16 %v462_v36, %v460_v25 }
  0xe1   : > { %v416_v37 = vpop.permute.xlu0 %415  ;;  %v304_v11 = vpop.permute.xlu1 %303 }
  0xe2   : > { %v308_v23 = vsel %vm307_vm5, %v1282_v19, %v304_v11  ;;  %v309_v24 = vsel %vm307_vm5, %v304_v11, %v1282_v19 }
  0xe3   : > { %v312_v19 = vmul.f32 %v310_v57, %v309_v24  ;;  %v313_v44 = vmul.f32 %v311_v62, %v308_v23 }
  0xe5   : > { %v456_v60 = vsel %vm1561_vm7, %v312_v19, %v428_v40  ;;  %v457_v63 = vsel %vm1561_vm7, %v313_v44, %v429_v41 }
  0xe9   : > { %v418_v4 = vpop.permute.xlu0 %417  ;;  %v473_v5 = vpop.permute.xlu1 %472 }
  0xea   : > { %v420_v7 = vsel %vm419_vm6, %v416_v37, %v418_v4  ;;  %v421_v8 = vsel %vm419_vm6, %v418_v4, %v416_v37  ;;  %v463_v37 = vsel %vm1561_vm7, %v393_v10, %v452_v3  ;;  %v293_v4 = vld [vmem:[%s1556_s2] sm:$0x1] }
  0xeb   : > { %v424_v12 = vmul.f32 %v1337_v58, %v420_v7  ;;  %v425_v13 = vmul.f32 %v1339_v59, %v421_v8  ;;  %v467_v50 = vpack.c.bf16 %v463_v37, %v461_v26 }
  0xed   : > { %v468_v18 = vpack.c.bf16 %v424_v12, %v424_v12  ;;  %v469_v20 = vpack.c.bf16 %v425_v13, %v425_v13 }
  0xef   : > { %v481_v27 = vsel %vm479_vm8, %v468_v18, 0  ;;  %v484_v28 = vsel %vm479_vm8, %v469_v20, 0 }
  0xf0   : > { %491 = vmatpush.bf16.msra.mxu0 %v481_v27  ;;  %504 = vmatpush.bf16.msra.mxu1 %v484_v28 }
  0xf1   : > { %v338_v45 = vpop.permute.xlu0 %337 }
  0xf2   : > { %v340_v47 = vsel %vm339_vm9, %v336_v31, %v338_v45  ;;  %v341_v48 = vsel %vm339_vm9, %v338_v45, %v336_v31 }
  0xf3   : > { %v344_v55 = vmul.f32 %v342_v21, %v341_v48  ;;  %v345_v56 = vmul.f32 %v343_v22, %v340_v47 }
  0xf4   : > { %492 = vmatpush.bf16.msra.mxu0 %v466_v49  ;;  %505 = vmatpush.bf16.msra.mxu1 %v467_v50 }
  0xf5   : > { %v458_v61 = vsel %vm1561_vm7, %v344_v55, %v434_v52  ;;  %v459_v1 = vsel %vm1561_vm7, %v345_v56, %v435_v53 }
  0xf6   : > { %v464_v2 = vpack.c.bf16 %v458_v61, %v456_v60  ;;  %v465_v3 = vpack.c.bf16 %v459_v1, %v457_v63 }
  0xf8   : > { %493 = vmatpush.bf16.msra.mxu0 %v464_v2  ;;  %506 = vmatpush.bf16.msra.mxu1 %v465_v3 }
  0xfb   : > { %868 = vmatmul.msk.bf16.vlgmr.msra.gmra.mxu0 %vm475_vm10, %v293_v4  ;;  %869 = vmatmul.msk.bf16.vlgmr.msra.gmra.mxu1 %vm475_vm10, %v293_v4 }
 0x178   : > { %v495_v6 = vpop.f32.mrf.mxu0  ;;  %v508_v7 = vpop.f32.mrf.mxu1 }
 0x179   : > { %v496_v8 = vadd.f32 %v495_v6, %v473_v5  ;;  %v509_v9 = vadd.f32 %v508_v7, %v473_v5 }
 0x17b   : > { %v870_v10 = vmul.f32 -1.442695, %v496_v8  ;;  %v871_v11 = vmul.f32 -1.442695, %v509_v9 }
 0x17d   : > { %955 = vpow2.f32 %v870_v10  ;;  %v553_v10 = vld [vmem:[%s1559_s5] sm:$0xf] }
 0x17e   : > { %957 = vpow2.f32 %v871_v11 }
 0x180   : > { %v497_v12 = vpop.f32.mrf.mxu0  ;;  %v510_v13 = vpop.f32.mrf.mxu1 }
 0x183   : > { %v956_v14 = vpop.eup %955 }
 0x184   : > { %v958_v15 = vpop.eup %957  ;;  %v518_v16 = vadd.f32 1.0, %v956_v14 }
 0x185   : > { %v519_v17 = vadd.f32 1.0, %v958_v15 }
 0x186   : > { %959 = vrcp.f32 %v518_v16  ;;  %v531_v26 = vand.u32 2147483648, %v518_v16  ;;  %v529_v31 = vand.u32 2147483647, %v518_v16  ;;  %vm525_vm13 = vweird.f32 %v518_v16 }
 0x187   : > { %961 = vrcp.f32 %v519_v17  ;;  %v546_v36 = vand.u32 2147483648, %v519_v17  ;;  %v544_v40 = vand.u32 2147483647, %v519_v17  ;;  %vm540_vm15 = vweird.f32 %v519_v17 }
 0x188   : > { %v532_v19 = vor.u32 1.1754944e-38, %v531_v26  ;;  %vm530_vm10 = vcmp.eq.f32.partialorder %v529_v31, 8.507059e+37 }
 0x189   : > { %v547_v47 = vor.u32 1.1754944e-38, %v546_v36  ;;  %vm545_vm3 = vcmp.eq.f32.partialorder %v544_v40, 8.507059e+37 }
 0x18c   : > { %v960_v18 = vpop.eup %959 }
 0x18d   : > { %v962_v20 = vpop.eup %961  ;;  %v521_v23 = vmul.f32 %v960_v18, %v518_v16  ;;  %vm526_vm11 = vweird.f32 %v960_v18 }
 0x18e   : > { %v536_v24 = vmul.f32 %v962_v20, %v519_v17  ;;  %vm541_vm12 = vweird.f32 %v962_v20  ;;  %vm527_vm14 = vmor %vm525_vm13, %vm526_vm11 }
 0x18f   : > { %v522_v25 = vsub.f32 1.0, %v521_v23  ;;  %vm542_vm7 = vmor %vm540_vm15, %vm541_vm12 }
 0x190   : > { %v537_v27 = vsub.f32 1.0, %v536_v24 }
 0x191   : > { %v523_v28 = vmul.f32 %v960_v18, %v522_v25 }
 0x192   : > { %v538_v37 = vmul.f32 %v962_v20, %v537_v27 }
 0x193   : > { %v524_v41 = vadd.f32 %v960_v18, %v523_v28 }
 0x194   : > { %v539_v44 = vadd.f32 %v962_v20, %v538_v37 }
 0x195   : > { %v528_v45 = vsel %vm527_vm14, %v960_v18, %v524_v41 }
 0x196   : > { %v533_v48 = vsel %vm530_vm10, %v532_v19, %v528_v45  ;;  %v543_v49 = vsel %vm542_vm7, %v962_v20, %v539_v44 }
 0x197   : > { %v1399_v50 = vmul.f32 %v533_v48, %v496_v8  ;;  %v548_v52 = vsel %vm545_vm3, %v547_v47, %v543_v49  ;;  %vm680_vm3 = vcmask 1040384  }
 0x198   : > { %v1401_v53 = vmul.f32 %v548_v52, %v509_v9 }
 0x199   : > { %586 = vrot.lane.b32.xlu1 %v1399_v50, %s1109_s8  ;;  %562 = vrot.lane.b32.xlu2 %v1399_v50, %s1107_s15 }
 0x19a   : > { %564 = vrot.lane.b32.xlu0 %v1401_v53, %s1107_s15 }
 0x1a1   : > { %612 = vrot.lane.b32.xlu1 %v1401_v53, %s1112_s13  ;;  %588 = vrot.lane.b32.xlu2 %v1401_v53, %s1109_s8  ;;  %s882_s8 = sshll.u32 %s1174_s28, 3  ;;  %s286_s28 = scalar_lea.vmem [#allocation7], %s865_s7 }
 0x1a2   : > { %610 = vrot.lane.b32.xlu0 %v1399_v50, %s1112_s13  ;;  %s772_s13 = scalar_lea.hbm %s1560_s6, %s882_s8  ;;  %s1051_s7 = scalar_lea.hbm %s1560_s6, 16 }
 0x1a3   : > { %s776_s19 = sshll.u32 %s772_s13, 4  ;;  %s777_s19 = int_to_ptr.hbm [resolvable:$true] %s776_s19 }
 0x1a4   : > { %s1045_s27 = sshra.s32 %s777_s19, 4  ;;  %s1046_s27 = int_to_ptr.hbm [resolvable:$true] %s1045_s27 }
 0x1a5   : > { %s1047_s20 = scalar_lea.hbm %s1046_s27, 8  ;;  %p1052_p12 = scmp.lt.s32.totalorder %s1046_s27, %s1560_s6 }
 0x1a6   : > { %p1048_p1 = scmp.ne.s32.totalorder %s1046_s27, %s1047_s20  ;;  %p1053_p8 = scmp.lt.s32.totalorder %s1051_s7, %s1047_s20 }
 0x1a8   : > { %p1049_p3 = pnand %p1048_p1, %p1210_p13  ;;  %p1054_p7 = por %p1053_p8, %p1052_p12 }
 0x1a9   : > { %594 = vrot.lane.b32.xlu1 %v1399_v50, %s1110_s9  ;;  %570 = vrot.lane.b32.xlu2 %v1399_v50, %s1113_s25 }
 0x1aa   : > { %572 = vrot.lane.b32.xlu0 %v1401_v53, %s1113_s25  ;;  %s774_s25 = sshll.u32 %s286_s28, 4  ;;  %p1050_p5 = pneg %p1049_p3  ;;  %s775_s25 = int_to_ptr.vmem [resolvable:$true] %s774_s25 }
 0x1ac   : > { %p1055_p9 = pnand %p1054_p7, %p1050_p5 }
 0x1b1   : > { %556 = vrot.lane.b32.xlu1 %v1401_v53, %s1106_s29  ;;  %596 = vrot.lane.b32.xlu2 %v1401_v53, %s1110_s9 }
 0x1b2   : > { %554 = vrot.lane.b32.xlu0 %v1399_v50, %s1106_s29 }
 0x1b9   : > { %602 = vrot.lane.b32.xlu1 %v1399_v50, %s1111_s10  ;;  %578 = vrot.lane.b32.xlu2 %v1399_v50, %s1108_s30 }
 0x1ba   : > { %580 = vrot.lane.b32.xlu0 %v1401_v53, %s1108_s30 }
 0x1c1   : > { %604 = vrot.lane.b32.xlu2 %v1401_v53, %s1111_s10 }
 0x1c2   : > { %673 = vperm.xlu0 %952, %v553_v10  }
 0x1f3   : > { %v563_v55 = vpop.permute.xlu2 %562 }
 0x1fb   : > { %v589_v56 = vpop.permute.xlu2 %588 }
 0x203   : > { %v571_v63 = vpop.permute.xlu2 %570 }
 0x20b   : > { %v587_v60 = vpop.permute.xlu1 %586  ;;  %v597_v7 = vpop.permute.xlu2 %596 }
 0x20c   : > { %v565_v61 = vpop.permute.xlu0 %564 }
 0x20d   : > { %v567_v16 = vsel %vm323_vm2, %v565_v61, %v563_v55  ;;  %v566_v17 = vsel %vm323_vm2, %v563_v55, %v565_v61  ;;  %vm1568_vm2 = vcmp.lt.s32.totalorder %v1287_v29, 1 }
 0x20e   : > { %v568_v25 = vmul.f32 %v567_v16, %v326_v42  ;;  %v569_v28 = vmul.f32 %v566_v17, %v327_v43 }
 0x210   : > { %v620_v41 = vrot.slane %v568_v25, 6  ;;  %v621_v19 = vrot.slane %v569_v28, 6 }
 0x213   : > { %v613_v1 = vpop.permute.xlu1 %612  ;;  %v579_v15 = vpop.permute.xlu2 %578 }
 0x214   : > { %v611_v2 = vpop.permute.xlu0 %610 }
 0x215   : > { %v614_v3 = vsel %vm419_vm6, %v611_v2, %v613_v1  ;;  %v615_v4 = vsel %vm419_vm6, %v613_v1, %v611_v2 }
 0x216   : > { %v616_v5 = vmul.f32 %v1337_v58, %v614_v3  ;;  %v617_v6 = vmul.f32 %v1339_v59, %v615_v4  ;;  %v590_v58 = vsel %vm371_vm1, %v587_v60, %v589_v56  ;;  %v591_v59 = vsel %vm371_vm1, %v589_v56, %v587_v60 }
 0x217   : > { %v592_v18 = vmul.f32 %v590_v58, %v374_v38  ;;  %v593_v20 = vmul.f32 %v591_v59, %v375_v39  ;;  %vm658_vm1 = vcmask 1045504  }
 0x218   : > { %v669_v8 = vpack.c.bf16 %v616_v5, %v616_v5  ;;  %v670_v9 = vpack.c.bf16 %v617_v6, %v617_v6 }
 0x219   : > { %v638_v31 = vrot.slane %v592_v18, 6  ;;  %v639_v36 = vrot.slane %v593_v20, 6 }
 0x21a   : > { %v682_v11 = vsel %vm680_vm3, %v669_v8, 0  ;;  %v685_v12 = vsel %vm680_vm3, %v670_v9, 0 }
 0x21b   : > { %693 = vmatpush.bf16.msra.mxu2 %v682_v11  ;;  %706 = vmatpush.bf16.msra.mxu3 %v685_v12  ;;  %v595_v13 = vpop.permute.xlu1 %594  ;;  %v605_v49 = vpop.permute.xlu2 %604  ;;  %v662_v52 = vsel %vm479_vm8, %v1401_v53, %v639_v36  ;;  %v552_v12 = vld [vmem:[%s1558_s4] sm:$0x3] }
 0x21c   : > { %v573_v14 = vpop.permute.xlu0 %572  ;;  %v598_v26 = vsel %vm387_vm4, %v595_v13, %v597_v7  ;;  %v599_v27 = vsel %vm387_vm4, %v597_v7, %v595_v13  ;;  %vm1569_vm4 = vmmov %vm1568_vm2 }
 0x21d   : > { %v574_v42 = vsel %vm339_vm9, %v571_v63, %v573_v14  ;;  %v575_v37 = vsel %vm339_vm9, %v573_v14, %v571_v63  ;;  %v600_v40 = vmul.f32 %v598_v26, %v390_v51  ;;  %v601_v43 = vmul.f32 %v599_v27, %v391_v54 }
 0x21e   : > { %v576_v47 = vmul.f32 %v575_v37, %v342_v21  ;;  %v577_v48 = vmul.f32 %v574_v42, %v343_v22  ;;  %v661_v54 = vsel %vm479_vm8, %v1399_v50, %v638_v31 }
 0x21f   : > { %v644_v55 = vrot.slane %v600_v40, 4 }
 0x220   : > { %v626_v3 = vrot.slane %v576_v47, 4  ;;  %v627_v4 = vrot.slane %v577_v48, 4 }
 0x223   : > { %v557_v23 = vpop.permute.xlu1 %556 }
 0x224   : > { %v555_v24 = vpop.permute.xlu0 %554 }
 0x225   : > { %v558_v38 = vsel %vm307_vm5, %v555_v24, %v557_v23  ;;  %v559_v39 = vsel %vm307_vm5, %v557_v23, %v555_v24 }
 0x226   : > { %v560_v44 = vmul.f32 %v559_v39, %v310_v57  ;;  %v561_v45 = vmul.f32 %v558_v38, %v311_v62  ;;  %v645_v57 = vrot.slane %v601_v43, 4 }
 0x228   : > { %v654_v1 = vsel %vm479_vm8, %v560_v44, %v620_v41  ;;  %v655_v2 = vsel %vm479_vm8, %v561_v45, %v621_v19  ;;  %vm676_vm8 = vcmask 146432  }
 0x22b   : > { %v603_v51 = vpop.permute.xlu1 %602 }
 0x22c   : > { %v581_v56 = vpop.permute.xlu0 %580  ;;  %v606_v62 = vsel %vm403_vm0, %v603_v51, %v605_v49  ;;  %v607_v21 = vsel %vm403_vm0, %v605_v49, %v603_v51  ;;  %vm1570_vm0 = vcmask 1043456  }
 0x22d   : > { %v582_v22 = vsel %vm1568_vm2, %v579_v15, %v581_v56  ;;  %v583_v60 = vsel %vm1569_vm4, %v581_v56, %v579_v15  ;;  %v608_v50 = vmul.f32 %v606_v62, %v406_v34  ;;  %v609_v53 = vmul.f32 %v607_v21, %v407_v35  ;;  %vm1571_vm5 = vmmov %vm1570_vm0 }
 0x22e   : > { %v584_v61 = vmul.f32 %v583_v60, %v358_v33  ;;  %v585_v63 = vmul.f32 %v582_v22, %v359_v46  ;;  %v663_v34 = vsel %vm1570_vm0, %v661_v54, %v644_v55  ;;  %v664_v35 = vsel %vm1571_vm5, %v662_v52, %v645_v57  ;;  %vm1572_vm6 = vmmov %vm1570_vm0 }
 0x22f   : > { %v650_v29 = vrot.slane %v608_v50, 2  ;;  %v651_v5 = vrot.slane %v609_v53, 2  ;;  %v656_v30 = vsel %vm1572_vm6, %v654_v1, %v626_v3  ;;  %vm1573_vm7 = vmmov %vm1570_vm0 }
 0x230   : > { %v632_v6 = vrot.slane %v584_v61, 2  ;;  %v633_v7 = vrot.slane %v585_v63, 2  ;;  %v657_v32 = vsel %vm1573_vm7, %v655_v2, %v627_v4 }
 0x231   : > { %v665_v33 = vsel %vm658_vm1, %v663_v34, %v650_v29  ;;  %v666_v46 = vsel %vm658_vm1, %v664_v35, %v651_v5 }
 0x232   : > { %v659_v8 = vsel %vm658_vm1, %v656_v30, %v632_v6  ;;  %v660_v9 = vsel %vm658_vm1, %v657_v32, %v633_v7  ;;  %vm1574_vm1 = vmmov %vm1570_vm0 }
 0x233   : > { %v667_v10 = vpack.c.bf16 %v665_v33, %v659_v8  ;;  %v668_v11 = vpack.c.bf16 %v666_v46, %v660_v9 }
 0x234   : > { %v674_v13 = vpop.permute.xlu0 %673 }
 0x235   : > { %694 = vmatpush.bf16.msra.mxu2 %v667_v10  ;;  %707 = vmatpush.bf16.msra.mxu3 %v668_v11 }
 0x238   : > { %872 = vmatmul.msk.bf16.vlgmr.msra.gmra.mxu2 %vm676_vm8, %v552_v12  ;;  %873 = vmatmul.msk.bf16.vlgmr.msra.gmra.mxu3 %vm676_vm8, %v552_v12 }
 0x2bb   : > { %v696_v14 = vpop.f32.mrf.mxu2  ;;  %v709_v58 = vpop.f32.mrf.mxu3 }
 0x2bc   : > { %v697_v59 = vadd.f32 %v696_v14, %v674_v13  ;;  %v710_v15 = vadd.f32 %v709_v58, %v674_v13 }
 0x2be   : > { %v874_v16 = vmul.f32 -1.442695, %v697_v59  ;;  %v875_v17 = vmul.f32 -1.442695, %v710_v15 }
 0x2c0   : > { %963 = vpow2.f32 %v874_v16 }
 0x2c1   : > { %965 = vpow2.f32 %v875_v17 }
 0x2c3   : > { %v698_v18 = vpop.f32.mrf.mxu2  ;;  %v711_v20 = vpop.f32.mrf.mxu3 }
 0x2c6   : > { %v964_v23 = vpop.eup %963 }
 0x2c7   : > { %v966_v24 = vpop.eup %965  ;;  %v719_v25 = vadd.f32 1.0, %v964_v23 }
 0x2c8   : > { %v720_v26 = vadd.f32 1.0, %v966_v24 }
 0x2c9   : > { %967 = vrcp.f32 %v719_v25  ;;  %v732_v37 = vand.u32 2147483648, %v719_v25  ;;  %v730_v43 = vand.u32 2147483647, %v719_v25  ;;  %vm726_vm12 = vweird.f32 %v719_v25 }
 0x2ca   : > { %969 = vrcp.f32 %v720_v26  ;;  %v747_v40 = vand.u32 2147483648, %v720_v26  ;;  %v745_v19 = vand.u32 2147483647, %v720_v26  ;;  %vm741_vm14 = vweird.f32 %v720_v26 }
 0x2cb   : > { %v733_v48 = vor.u32 1.1754944e-38, %v732_v37  ;;  %vm731_vm10 = vcmp.eq.f32.partialorder %v730_v43, 8.507059e+37 }
 0x2cc   : > { %v748_v49 = vor.u32 1.1754944e-38, %v747_v40  ;;  %vm746_vm3 = vcmp.eq.f32.partialorder %v745_v19, 8.507059e+37 }
 0x2cf   : > { %v968_v27 = vpop.eup %967 }
 0x2d0   : > { %v970_v28 = vpop.eup %969  ;;  %v722_v31 = vmul.f32 %v968_v27, %v719_v25  ;;  %vm727_vm9 = vweird.f32 %v968_v27 }
 0x2d1   : > { %v737_v36 = vmul.f32 %v970_v28, %v720_v26  ;;  %vm742_vm11 = vweird.f32 %v970_v28  ;;  %vm728_vm13 = vmor %vm726_vm12, %vm727_vm9 }
 0x2d2   : > { %v723_v38 = vsub.f32 1.0, %v722_v31  ;;  %vm743_vm15 = vmor %vm741_vm14, %vm742_vm11 }
 0x2d3   : > { %v738_v39 = vsub.f32 1.0, %v737_v36 }
 0x2d4   : > { %v724_v42 = vmul.f32 %v968_v27, %v723_v38 }
 0x2d5   : > { %v739_v41 = vmul.f32 %v970_v28, %v738_v39 }
 0x2d6   : > { %v725_v44 = vadd.f32 %v968_v27, %v724_v42 }
 0x2d7   : > { %v740_v45 = vadd.f32 %v970_v28, %v739_v41 }
 0x2d8   : > { %v729_v47 = vsel %vm728_vm13, %v968_v27, %v725_v44 }
 0x2d9   : > { %v744_v51 = vsel %vm743_vm15, %v970_v28, %v740_v45  ;;  %v734_v54 = vsel %vm731_vm10, %v733_v48, %v729_v47 }
 0x2da   : > { %v749_v52 = vsel %vm746_vm3, %v748_v49, %v744_v51  ;;  %v751_v57 = vmul.f32 %v734_v54, %v697_v59 }
 0x2db   : > { %v752_v55 = vmul.f32 %v749_v52, %v710_v15 }
 0x2dd   : > { %v755_v56 = vrot.slane %v752_v55, 4 }
 0x2df   : > { %v756_v62 = vsel %vm1574_vm1, %v751_v57, %v755_v56 }
 0x2e0   : > { %v758_v21 = vadd.f32 %v756_v62, %v1255_v0 }
 0x2e2   : > { %759 = vst [vmem:[%s286_s28] sm:$0xff] %v758_v21 }
 0x2e3   : > { %1058 = shalt.err (!%p1055_p9)
}
 0x2e4   : > { %889 = dma.vmem_to_hbm [thread:$0]  (%p1210_p13), %s775_s25, 128, %s777_s19, %s761_s26  }
 0x2e5 PF: > { %s788_s17 = sand.u32 1, %s1089_s21   ;;  %p1575_p10 = scmp.ge.s32.totalorder %s1101_s24, 2 }
 0x2e6   : > { %s789_s8 = scalar_lea.sflag [#allocation4], %s788_s17 }
 0x2e7   : > { %p900_p11 = pnand %p1575_p10, %p1215_p4 }
 0x2e9   : > { %p901_p0 = pneg %p900_p11 }
 0x2eb   : > { %1084 = dma.done.wait (%p901_p0), %s789_s8, 128  }
 0x2ec   : > { %1086 = vsyncadd (%p901_p0), %s789_s8, 4294967168  ;;  %p20_p2 = scmp.ge.s32.totalorder %s1190_s11, 4   ;;  %s1576_s21 = smov %s1093_s22 }
 0x2ed   : > { %s1577_s22 = smov %s1097_s23  ;;  %s1578_s23 = smov %s1202_s14 }
 0x2ee   : > { %s1579_s24 = smov %s1190_s11  ;;  %22 = sbr.rel (!%p20_p2) target bundleno = 6 (0x6), region = 93 }
 0x2f3   :  { %795 = vsyncpa [#allocation3], 1 }
 0x2f4   :  { %797 = vsyncpa [#allocation3 + $0x1], 1 }
 0x2f5   :  { %798 = vsyncpa [#allocation6], 1 }
 0x2f6   :  { %799 = vsyncpa [#allocation4], 1 }
 0x2f7   :  { %801 = vsyncpa [#allocation4 + $0x1], 1 }

</bundles_post_ra>
